<compile_context>
chip_gen: v7x
topology: tpu7x:2x2x1
jax: 0.10.0
libtpu: 0.0.40
codegen_flags: <defaults>
</compile_context>

<pallas_src>
import functools

import jax
import jax.numpy as jnp
from jax.experimental import pallas as pl
from jax.experimental.pallas import tpu as pltpu


def _round_up(a, m):
    return ((a + m - 1) // m) * m


def _value_net_kernel(x_ref, w1t_ref, b1_ref, w2_ref, b2_ref, out_ref, *,
                      chunk, num_chunks):
    # x tile: (TB, S) with batch on sublanes; weights pre-transposed / pre-cast
    # in the wrapper, so there are no per-step casts on the resident tiles.
    w1t = w1t_ref[...]                      # (H, S)  compute dtype
    b1 = b1_ref[...]                        # (H, 1)  f32
    w2 = w2_ref[...]                        # (H, 1)  f32
    b2 = b2_ref[0]                          # scalar  f32 (SMEM)

    # Static chunk loop over the batch (lane) axis of this tile; offsets are
    # compile-time constants, so every pl.ds start is known-aligned and the
    # (H, chunk) intermediate never exceeds ~16 vregs.
    for c in range(num_chunks):
        off = c * chunk
        x = x_ref[pl.ds(off, chunk), :]     # (CH, S)  compute dtype

        # fc1 on the MXU, contracting S of both operands (q@k^T pattern):
        #   (H, S) x (CH, S)^T -> (H, CH)  -- batch ends up on the lane axis.
        h = jax.lax.dot_general(
            w1t, x,
            dimension_numbers=(((1,), (1,)), ((), ())),
            preferred_element_type=jnp.float32)

        # Bias + ReLU in f32 on the VPU (b1 is an (H,1) column, broadcast over lanes).
        h = jnp.maximum(h + b1, 0.0)

        # fc2 as VPU multiply + sublane reduce (XLU): lane-dense (1, CH) row.
        v = jnp.sum(h * w2, axis=0, keepdims=True) + b2

        out_ref[:, pl.ds(off, chunk)] = v.astype(out_ref.dtype)


@functools.partial(jax.jit,
                   static_argnames=("block_b", "chunk_b", "compute_dtype",
                                    "x_buffers"))
def value_network_forward(x, w1, b1, w2, b2, *, block_b=512, chunk_b=256,
                          compute_dtype=None, x_buffers=2):
    """x: [B, state_dim], w1: [state_dim, H], b1: [H], w2: [H, 1], b2: [1]."""
    B, S = x.shape
    H = w1.shape[1]
    out_dtype = x.dtype
    if compute_dtype is None:
        compute_dtype = x.dtype            # f32 default (best on v5e)
    compute_dtype = jnp.dtype(compute_dtype)

    # ---- Tile-size selection -------------------------------------------------
    # Lane-chunk (multiple of 128 so chunked output stores stay lane-dense).
    CH = max(128, (min(chunk_b, block_b) // 128) * 128)
    # Batch tile: multiple of CH, large enough to amortize per-step overhead,
    # but no larger than the (rounded) batch, and capped so batches bigger than
    # one chunk still give >= 2 grid steps (v7x megacore sharding).
    TB = max(CH, (block_b // CH) * CH)
    TB = min(TB, _round_up(B, CH))
    if B > CH:
        TB = min(TB, max(CH, _round_up(pl.cdiv(B, 2), CH)))
    TB = max(TB, CH)
    num_chunks = TB // CH

    grid_len = pl.cdiv(B, TB)              # no jnp.pad: Pallas handles ragged last block
    B_out = grid_len * TB                  # padded output width (lane-dense stores)
    grid = (grid_len,)

    # ---- One-time (tiny) weight relayouts / casts in the wrapper --------------
    if x.dtype != compute_dtype:
        x = x.astype(compute_dtype)        # stream narrower x (v6e/v7x bf16 path)
    w1t = w1.T.astype(compute_dtype)       # (H, S)
    b1c = b1.astype(jnp.float32).reshape(H, 1)
    w2c = w2.astype(jnp.float32).reshape(H, 1)
    b2s = b2.astype(jnp.float32).reshape(1)

    in_itemsize = compute_dtype.itemsize
    out_itemsize = jnp.dtype(out_dtype).itemsize

    # ---- Actual VMEM footprint (x is the only meaningfully-sized operand) -----
    x_bytes = x_buffers * TB * S * in_itemsize
    w_bytes = 2 * (H * S * in_itemsize + 2 * H * 4)
    o_bytes = 2 * TB * out_itemsize
    vmem_limit = int(max(2 * (x_bytes + w_bytes + o_bytes), 4 * 1024 * 1024))

    flops = 2 * B_out * H * (S + 1)
    bytes_accessed = (B_out * S * in_itemsize            # x stream
                      + H * S * in_itemsize + (2 * H + 1) * 4   # weights/biases
                      + B_out * out_itemsize)            # output row

    # x spec: streamed batch tiles; optional triple-buffering (sweep knob) if
    # DMA issue latency is still exposed after enlarging TB.
    if x_buffers > 2:
        x_spec = pl.BlockSpec((TB, S), lambda i: (i, 0),
                              pipeline_mode=pl.Buffered(x_buffers))
    else:
        x_spec = pl.BlockSpec((TB, S), lambda i: (i, 0))

    kernel = functools.partial(_value_net_kernel, chunk=CH,
                               num_chunks=num_chunks)

    out_row = pl.pallas_call(
        kernel,
        out_shape=jax.ShapeDtypeStruct((1, B_out), out_dtype),
        grid=grid,
        in_specs=[
            x_spec,                                         # x: streamed
            pl.BlockSpec((H, S), lambda i: (0, 0)),         # w1^T: VMEM-resident
            pl.BlockSpec((H, 1), lambda i: (0, 0)),         # b1 column
            pl.BlockSpec((H, 1), lambda i: (0, 0)),         # w2 column
            pl.BlockSpec(memory_space=pltpu.MemorySpace.SMEM),  # b2 scalar
        ],
        out_specs=pl.BlockSpec((1, TB), lambda i: (0, i)),  # lane-dense row
        compiler_params=pltpu.CompilerParams(
            dimension_semantics=("parallel",),
            vmem_limit_bytes=vmem_limit,
        ),
        cost_estimate=pl.CostEstimate(
            flops=flops, transcendentals=0, bytes_accessed=bytes_accessed),
    )(x, w1t, b1c, w2c, b2s)

    # Lane-dense (1, B_out) row -> (B, 1) column. Columns [B:B_out] hold garbage
    # from the ragged last block and are sliced off here; never read them.
    return out_row[0, :B].reshape(B, 1)


def init_value_network_params(key, state_dim, minibatch):
    """PyTorch-style nn.Linear init: U(-1/sqrt(fan_in), 1/sqrt(fan_in))."""
    k1, k2, k3, k4 = jax.random.split(key, 4)
    bound1 = 1.0 / (state_dim ** 0.5)
    bound2 = 1.0 / (minibatch ** 0.5)
    # Stored pre-transposed as [in, out] so the math matches x @ W.
    w1 = jax.random.uniform(k1, (state_dim, minibatch), jnp.float32,
                            minval=-bound1, maxval=bound1)
    b1 = jax.random.uniform(k2, (minibatch,), jnp.float32,
                            minval=-bound1, maxval=bound1)
    w2 = jax.random.uniform(k3, (minibatch, 1), jnp.float32,
                            minval=-bound2, maxval=bound2)
    b2 = jax.random.uniform(k4, (1,), jnp.float32,
                            minval=-bound2, maxval=bound2)
    return w1, b1, w2, b2


def _reference(x, w1, b1, w2, b2):
    return jnp.maximum(x @ w1 + b1, 0.0) @ w2 + b2


if __name__ == "__main__":
    key = jax.random.PRNGKey(0)
    k_x, k_x2, k_p = jax.random.split(key, 3)

    batch = 8
    state_dim = 32
    minibatch = 64  # hidden width of fc1

    x = jax.random.normal(k_x, (batch, state_dim), jnp.float32)
    w1, b1, w2, b2 = init_value_network_params(k_p, state_dim, minibatch)
    ref = _reference(x, w1, b1, w2, b2)

    # f32 path (exact), small batch / single grid step.
    out = value_network_forward(x, w1, b1, w2, b2)
    out = jax.block_until_ready(out)
    assert out.shape == (batch, 1)
    assert jnp.allclose(out, ref, atol=1e-5, rtol=1e-5)

    # Ragged batch that exercises multi-step grid + chunked epilogue + partial
    # last block (no wrapper-side padding of x).
    batch2 = 300
    x2 = jax.random.normal(k_x2, (batch2, state_dim), jnp.float32)
    ref2 = _reference(x2, w1, b1, w2, b2)
    out2 = jax.block_until_ready(value_network_forward(x2, w1, b1, w2, b2))
    assert out2.shape == (batch2, 1)
    assert jnp.allclose(out2, ref2, atol=1e-5, rtol=1e-5)

    # bf16 x-stream path (v6e/v7x bandwidth optimization) -- looser tolerance.
    out_bf16 = value_network_forward(x2, w1, b1, w2, b2,
                                     compute_dtype=jnp.bfloat16)
    out_bf16 = jax.block_until_ready(out_bf16)
    assert jnp.allclose(out_bf16, ref2, atol=2e-2, rtol=2e-2)

    print("KERNEL_OK")
</pallas_src>

<mosaic_0001>
module attributes {stable_mosaic.version = 11 : i64} {
  func.func @_value_net_kernel(%arg0: i32, %arg1: memref<256x32xf32, #tpu.memory_space<vmem>>, %arg2: memref<64x32xf32, #tpu.memory_space<vmem>>, %arg3: memref<64x1xf32, #tpu.memory_space<vmem>>, %arg4: memref<64x1xf32, #tpu.memory_space<vmem>>, %arg5: memref<1xf32, #tpu.memory_space<smem>>, %arg6: memref<1x256xf32, #tpu.memory_space<vmem>>) attributes {dimension_semantics = [#tpu.dimension_semantics<parallel>], iteration_bounds = array<i64: 1>, scalar_prefetch = 0 : i64, scratch_operands = 0 : i64, tpu.core_type = #tpu.core_type<tc>, window_params = [{transform_indices = @transform_0, window_bounds = array<i64: 256, 32>}, {pipeline_mode = #tpu.pipeline_mode<synchronous>, transform_indices = @transform_1, window_bounds = array<i64: 64, 32>}, {pipeline_mode = #tpu.pipeline_mode<synchronous>, transform_indices = @transform_2, window_bounds = array<i64: 64, 1>}, {pipeline_mode = #tpu.pipeline_mode<synchronous>, transform_indices = @transform_3, window_bounds = array<i64: 64, 1>}, {transform_indices = @transform_4, window_bounds = array<i64: 1>}, {transform_indices = @transform_5, window_bounds = array<i64: 1, 256>}]} {
    %c0 = arith.constant 0 : index
    %c0_0 = arith.constant 0 : index
    %0 = vector.load %arg2[%c0, %c0_0] : memref<64x32xf32, #tpu.memory_space<vmem>>, vector<64x32xf32>
    %c0_1 = arith.constant 0 : index
    %c0_2 = arith.constant 0 : index
    %1 = vector.load %arg3[%c0_1, %c0_2] : memref<64x1xf32, #tpu.memory_space<vmem>>, vector<64x1xf32>
    %c0_3 = arith.constant 0 : index
    %c0_4 = arith.constant 0 : index
    %2 = vector.load %arg4[%c0_3, %c0_4] : memref<64x1xf32, #tpu.memory_space<vmem>>, vector<64x1xf32>
    %c0_5 = arith.constant 0 : index
    %3 = memref.load %arg5[%c0_5] : memref<1xf32, #tpu.memory_space<smem>>
    %c0_6 = arith.constant 0 : index
    %c0_7 = arith.constant 0 : index
    %4 = vector.load %arg1[%c0_6, %c0_7] : memref<256x32xf32, #tpu.memory_space<vmem>>, vector<256x32xf32>
    %cst = arith.constant dense<0.000000e+00> : vector<64x256xf32>
    %5 = tpu.matmul %0, %4, %cst {dimension_numbers = #tpu.dot_dimension_numbers<[1], [1], [0], [0], [0, 0, 1, 0], [], []>} : vector<64x32xf32>, vector<256x32xf32>, vector<64x256xf32> -> vector<64x256xf32>
    %6 = vector.broadcast %1 : vector<64x1xf32> to vector<64x256xf32>
    %7 = arith.addf %5, %6 : vector<64x256xf32>
    %cst_8 = arith.constant 0.000000e+00 : f32
    %8 = vector.broadcast %cst_8 : f32 to vector<64x256xf32>
    %9 = arith.maximumf %7, %8 : vector<64x256xf32>
    %10 = vector.broadcast %2 : vector<64x1xf32> to vector<64x256xf32>
    %11 = arith.mulf %9, %10 : vector<64x256xf32>
    %cst_9 = arith.constant dense<0.000000e+00> : vector<256xf32>
    %12 = vector.multi_reduction <add>, %11, %cst_9 [0] : vector<64x256xf32> to vector<256xf32>
    %13 = vector.shape_cast %12 : vector<256xf32> to vector<1x256xf32>
    %14 = vector.broadcast %3 : f32 to vector<1x256xf32>
    %15 = arith.addf %13, %14 : vector<1x256xf32>
    %c0_10 = arith.constant 0 : index
    %c0_11 = arith.constant 0 : index
    %16 = vector.load %arg6[%c0_10, %c0_11] : memref<1x256xf32, #tpu.memory_space<vmem>>, vector<1x256xf32>
    tpu.vector_store %arg6[%c0_10, %c0_11], %15 {strides = array<i32>} : memref<1x256xf32, #tpu.memory_space<vmem>>, vector<1x256xf32>,
    return
  }
  func.func @transform_0(%arg0: i32) -> (i32, i32) {
    %c0_i32 = arith.constant 0 : i32
    %c0_i32_0 = arith.constant 0 : i32
    return %arg0, %c0_i32 : i32, i32
  }
  func.func @transform_1(%arg0: i32) -> (i32, i32) {
    %c0_i32 = arith.constant 0 : i32
    %c0_i32_0 = arith.constant 0 : i32
    %c0_i32_1 = arith.constant 0 : i32
    return %c0_i32, %c0_i32_0 : i32, i32
  }
  func.func @transform_2(%arg0: i32) -> (i32, i32) {
    %c0_i32 = arith.constant 0 : i32
    %c0_i32_0 = arith.constant 0 : i32
    %c0_i32_1 = arith.constant 0 : i32
    return %c0_i32, %c0_i32_0 : i32, i32
  }
  func.func @transform_3(%arg0: i32) -> (i32, i32) {
    %c0_i32 = arith.constant 0 : i32
    %c0_i32_0 = arith.constant 0 : i32
    %c0_i32_1 = arith.constant 0 : i32
    return %c0_i32, %c0_i32_0 : i32, i32
  }
  func.func @transform_4(%arg0: i32) -> i32 {
    %c0_i32 = arith.constant 0 : i32
    %c0_i32_0 = arith.constant 0 : i32
    return %c0_i32 : i32
  }
  func.func @transform_5(%arg0: i32) -> (i32, i32) {
    %c0_i32 = arith.constant 0 : i32
    %c0_i32_0 = arith.constant 0 : i32
    return %c0_i32, %arg0 : i32, i32
  }
}

</mosaic_0001>

<bundles_post_ra>
// kernel: value_network_forward.1
= control target key start
LH: loop header
LB: loop body
LE: loop exit
PB: predicated region body
PF: predicated region fallthrough
CT: control target
= control target key end

     0   :  { %vm118_vm0 = vcmask 261120   ;;  %v636_v3 = vmov 0   ;;  %s936_s0 = inlined_call_operand.vmem [shape: f32[8,32], index: 0, kind: input, shape index: {}]   ;;  %s937_s1 = inlined_call_operand.vmem [shape: f32[64,32], index: 1, kind: input, shape index: {}]   ;;  %s938_s2 = inlined_call_operand.vmem [shape: f32[64,1], index: 2, kind: input, shape index: {}]   ;;  %s939_s3 = inlined_call_operand.vmem [shape: f32[64,1], index: 3, kind: input, shape index: {}]   ;;  %s940_s4 = inlined_call_operand.<no memory space> [shape: f32[1], index: 4, kind: input, shape index: {}]   ;;  %s941_s5 = inlined_call_operand.vmem [shape: f32[1,256], index: 5, kind: output, shape index: {}]  }
   0x1   :  { %v62_v0 = vld [vmem:[%s936_s0 + $0x80] sm:$0xff]  ;;  %v63_v1 = vld [vmem:[%s936_s0 + $0x88] sm:$0xff]  ;;  %vm676_vm1 = vmpackc.low %vm118_vm0, %vm118_vm0  ;;  %634 = vset.pattern.permute.xlu0 %v636_v3  ;;  %635 = vset.pattern.permute.xlu1 %v636_v3 }
   0x2   :  { %v568_v4 = vpack.c.bf16 %v63_v1, %v62_v0  ;;  %v46_v5 = vld [vmem:[%s936_s0] sm:$0xff]  ;;  %v47_v6 = vld [vmem:[%s936_s0 + $0x8] sm:$0xff]  ;;  %v64_v7 = vld [vmem:[%s936_s0 + $0x90] sm:$0xff] }
   0x3   :  { %v571_v8 = vpack.c.bf16 %v47_v6, %v46_v5  ;;  %v65_v9 = vld [vmem:[%s936_s0 + $0x98] sm:$0xff]  ;;  %v48_v11 = vld [vmem:[%s936_s0 + $0x10] sm:$0xff]  ;;  %v66_v13 = vld [vmem:[%s936_s0 + $0xa0] sm:$0xff] }
   0x4   :  { %570 = vmatprep.subr.msk.bf16.mxu0 %vm676_vm1, %v568_v4  ;;  %616 = vmatprep.subr.msk.bf16.mxu1 %vm676_vm1, %v568_v4  ;;  %v574_v10 = vpack.c.bf16 %v65_v9, %v64_v7  ;;  %v49_v12 = vld [vmem:[%s936_s0 + $0x18] sm:$0xff]  ;;  %v67_v14 = vld [vmem:[%s936_s0 + $0xa8] sm:$0xff]  ;;  %v719_v17 = vld [vmem:[%s937_s1] sm:$0xff] }
   0x5   :  { %573 = vmatpush3.bf16.xpose.msk.msra.mxu0 %vm676_vm1, %v571_v8  ;;  %624 = vmatpush3.bf16.xpose.msk.msra.mxu1 %vm676_vm1, %v571_v8  ;;  %v577_v15 = vpack.c.bf16 %v49_v12, %v48_v11  ;;  %v580_v16 = vpack.c.bf16 %v67_v14, %v66_v13  ;;  %v724_v18 = vld [vmem:[%s937_s1 + $0x20] sm:$0xff]  ;;  %v51_v20 = vld [vmem:[%s936_s0 + $0x28] sm:$0xff]  ;;  %v68_v22 = vld [vmem:[%s936_s0 + $0xb0] sm:$0xff] }
   0x6   :  { %576 = vmatprep.subr.msk.bf16.mxu0 %vm676_vm1, %v574_v10  ;;  %617 = vmatprep.subr.msk.bf16.mxu1 %vm676_vm1, %v574_v10  ;;  %v50_v19 = vld [vmem:[%s936_s0 + $0x20] sm:$0xff]  ;;  %v69_v23 = vld [vmem:[%s936_s0 + $0xb8] sm:$0xff]  ;;  %v31_v24 = vld [vmem:[%s938_s2 + $0x10] sm:$0xff] }
   0x7   :  { %v29_v21 = vld [vmem:[%s938_s2] sm:$0xff]  ;;  %552 = vmatprep.mubr.msk.f32.mxu0 %vm118_vm0, %v719_v17  ;;  %560 = vmatprep.mubr.msk.f32.mxu1 %vm118_vm0, %v724_v18  ;;  %v583_v25 = vpack.c.bf16 %v51_v20, %v50_v19  ;;  %v30_v26 = vld [vmem:[%s938_s2 + $0x8] sm:$0xff]  ;;  %v32_v27 = vld [vmem:[%s938_s2 + $0x18] sm:$0xff]  ;;  %v586_v28 = vpack.c.bf16 %v69_v23, %v68_v22 }
   0x8   :  { %80 = vperm.xlu0 %634, %v29_v21   ;;  %90 = vperm.xlu1 %635, %v31_v24   ;;  %v37_v29 = vld [vmem:[%s939_s3] sm:$0xff]  ;;  %v38_v30 = vld [vmem:[%s939_s3 + $0x8] sm:$0xff]  ;;  %v52_v31 = vld [vmem:[%s936_s0 + $0x30] sm:$0xff] }
   0x9   :  { %v53_v32 = vld [vmem:[%s936_s0 + $0x38] sm:$0xff]  ;;  %v70_v33 = vld [vmem:[%s936_s0 + $0xc0] sm:$0xff]  ;;  %v71_v34 = vld [vmem:[%s936_s0 + $0xc8] sm:$0xff] }
   0xa   :  { %v589_v35 = vpack.c.bf16 %v53_v32, %v52_v31  ;;  %v33_v36 = vld [vmem:[%s938_s2 + $0x20] sm:$0xff]  ;;  %v39_v37 = vld [vmem:[%s939_s3 + $0x10] sm:$0xff]  ;;  %v592_v38 = vpack.c.bf16 %v71_v34, %v70_v33  ;;  %v34_v39 = vld [vmem:[%s938_s2 + $0x28] sm:$0xff] }
   0xb   :  { %v40_v40 = vld [vmem:[%s939_s3 + $0x18] sm:$0xff]  ;;  %v54_v41 = vld [vmem:[%s936_s0 + $0x40] sm:$0xff]  ;;  %v55_v42 = vld [vmem:[%s936_s0 + $0x48] sm:$0xff] }
   0xc   :  { %85 = vperm.xlu0 %634, %v30_v26   ;;  %95 = vperm.xlu1 %635, %v32_v27   ;;  %v72_v43 = vld [vmem:[%s936_s0 + $0xd0] sm:$0xff]  ;;  %v73_v44 = vld [vmem:[%s936_s0 + $0xd8] sm:$0xff]  ;;  %v595_v45 = vpack.c.bf16 %v55_v42, %v54_v41  ;;  %v41_v47 = vld [vmem:[%s939_s3 + $0x20] sm:$0xff] }
   0xd   :  { %579 = vmatpush3.bf16.xpose.msk.msra.mxu0 %vm676_vm1, %v577_v15  ;;  %625 = vmatpush3.bf16.xpose.msk.msra.mxu1 %vm676_vm1, %v577_v15  ;;  %v35_v46 = vld [vmem:[%s938_s2 + $0x30] sm:$0xff]  ;;  %v598_v48 = vpack.c.bf16 %v73_v44, %v72_v43  ;;  %v36_v49 = vld [vmem:[%s938_s2 + $0x38] sm:$0xff]  ;;  %v42_v50 = vld [vmem:[%s939_s3 + $0x28] sm:$0xff] }
   0xe   :  { %582 = vmatprep.subr.msk.bf16.mxu0 %vm676_vm1, %v580_v16  ;;  %618 = vmatprep.subr.msk.bf16.mxu1 %vm676_vm1, %v580_v16  ;;  %v56_v51 = vld [vmem:[%s936_s0 + $0x50] sm:$0xff]  ;;  %v57_v52 = vld [vmem:[%s936_s0 + $0x58] sm:$0xff]  ;;  %v74_v53 = vld [vmem:[%s936_s0 + $0xe0] sm:$0xff] }
   0xf   :  { %v75_v54 = vld [vmem:[%s936_s0 + $0xe8] sm:$0xff]  ;;  %v601_v55 = vpack.c.bf16 %v57_v52, %v56_v51  ;;  %v43_v56 = vld [vmem:[%s939_s3 + $0x30] sm:$0xff]  ;;  %v44_v57 = vld [vmem:[%s939_s3 + $0x38] sm:$0xff] }
  0x10   :  { %370 = vperm.xlu0 %634, %v37_v29   ;;  %375 = vperm.xlu1 %635, %v38_v30   ;;  %v604_v58 = vpack.c.bf16 %v75_v54, %v74_v53  ;;  %v58_v59 = vld [vmem:[%s936_s0 + $0x60] sm:$0xff]  ;;  %v59_v60 = vld [vmem:[%s936_s0 + $0x68] sm:$0xff]  ;;  %v76_v61 = vld [vmem:[%s936_s0 + $0xf0] sm:$0xff] }
  0x11   :  { %v77_v62 = vld [vmem:[%s936_s0 + $0xf8] sm:$0xff]  ;;  %v607_v63 = vpack.c.bf16 %v59_v60, %v58_v59  ;;  %v60_v1 = vld [vmem:[%s936_s0 + $0x70] sm:$0xff]  ;;  %v22_v5 = vld [vmem:[%s937_s1 + $0x8] sm:$0xff] }
  0x12   :  { %v610_v0 = vpack.c.bf16 %v77_v62, %v76_v61  ;;  %v61_v3 = vld [vmem:[%s936_s0 + $0x78] sm:$0xff]  ;;  %v26_v6 = vld [vmem:[%s937_s1 + $0x28] sm:$0xff]  ;;  %v23_v2 = vld [vmem:[%s937_s1 + $0x10] sm:$0xff] }
  0x13   :  { %v613_v4 = vpack.c.bf16 %v61_v3, %v60_v1  ;;  %v27_v7 = vld [vmem:[%s937_s1 + $0x30] sm:$0xff]  ;;  %v24_v8 = vld [vmem:[%s937_s1 + $0x18] sm:$0xff] }
  0x14   :  { %100 = vperm.xlu0 %634, %v33_v36   ;;  %380 = vperm.xlu1 %635, %v39_v37   ;;  %v28_v9 = vld [vmem:[%s937_s1 + $0x38] sm:$0xff] }
  0x15   :  { %585 = vmatpush3.bf16.xpose.msk.msra.mxu0 %vm676_vm1, %v583_v25  ;;  %626 = vmatpush3.bf16.xpose.msk.msra.mxu1 %vm676_vm1, %v583_v25 }
  0x16   :  { %588 = vmatprep.subr.msk.bf16.mxu0 %vm676_vm1, %v586_v28  ;;  %619 = vmatprep.subr.msk.bf16.mxu1 %vm676_vm1, %v586_v28 }
  0x18   :  { %105 = vperm.xlu0 %634, %v34_v39   ;;  %385 = vperm.xlu1 %635, %v40_v40  }
  0x1c   :  { %110 = vperm.xlu0 %634, %v35_v46   ;;  %390 = vperm.xlu1 %635, %v41_v47  }
  0x1d   :  { %591 = vmatpush3.bf16.xpose.msk.msra.mxu0 %vm676_vm1, %v589_v35  ;;  %627 = vmatpush3.bf16.xpose.msk.msra.mxu1 %vm676_vm1, %v589_v35 }
  0x1e   :  { %594 = vmatprep.subr.msk.bf16.mxu0 %vm676_vm1, %v592_v38  ;;  %620 = vmatprep.subr.msk.bf16.mxu1 %vm676_vm1, %v592_v38 }
  0x20   :  { %115 = vperm.xlu0 %634, %v36_v49   ;;  %395 = vperm.xlu1 %635, %v42_v50  }
  0x24   :  { %400 = vperm.xlu0 %634, %v43_v56   ;;  %405 = vperm.xlu1 %635, %v44_v57  }
  0x25   :  { %597 = vmatpush3.bf16.xpose.msk.msra.mxu0 %vm676_vm1, %v595_v45  ;;  %628 = vmatpush3.bf16.xpose.msk.msra.mxu1 %vm676_vm1, %v595_v45 }
  0x26   :  { %600 = vmatprep.subr.msk.bf16.mxu0 %vm676_vm1, %v598_v48  ;;  %621 = vmatprep.subr.msk.bf16.mxu1 %vm676_vm1, %v598_v48 }
  0x2d   :  { %603 = vmatpush3.bf16.xpose.msk.msra.mxu0 %vm676_vm1, %v601_v55  ;;  %629 = vmatpush3.bf16.xpose.msk.msra.mxu1 %vm676_vm1, %v601_v55 }
  0x2e   :  { %606 = vmatprep.subr.msk.bf16.mxu0 %vm676_vm1, %v604_v58  ;;  %622 = vmatprep.subr.msk.bf16.mxu1 %vm676_vm1, %v604_v58 }
  0x35   :  { %609 = vmatpush3.bf16.xpose.msk.msra.mxu0 %vm676_vm1, %v607_v63  ;;  %630 = vmatpush3.bf16.xpose.msk.msra.mxu1 %vm676_vm1, %v607_v63 }
  0x36   :  { %612 = vmatprep.subr.msk.bf16.mxu0 %vm676_vm1, %v610_v0  ;;  %623 = vmatprep.subr.msk.bf16.mxu1 %vm676_vm1, %v610_v0 }
  0x3d   :  { %615 = vmatpush3.bf16.xpose.msk.msra.mxu0 %vm676_vm1, %v613_v4  ;;  %631 = vmatpush3.bf16.xpose.msk.msra.mxu1 %vm676_vm1, %v613_v4 }
  0x44   :  { %553 = vmatmul.mubr.msk.f32.vlgmr.msra.gmra.mrb[0].mxu0 %vm118_vm0, %v719_v17  ;;  %561 = vmatmul.mubr.msk.f32.vlgmr.msra.gmra.mrb[0].mxu1 %vm118_vm0, %v724_v18 }
  0x45   :  { %554 = vmatprep.mubr.msk.f32.mxu0 %vm118_vm0, %v22_v5  ;;  %562 = vmatprep.mubr.msk.f32.mxu1 %vm118_vm0, %v26_v6 }
  0x48   :  { %555 = vmatmul.mubr.msk.f32.gmra.mrb[2].mxu0 %vm118_vm0, %v22_v5  ;;  %563 = vmatmul.mubr.msk.f32.gmra.mrb[2].mxu1 %vm118_vm0, %v26_v6 }
  0x49   :  { %556 = vmatprep.mubr.msk.f32.mxu0 %vm118_vm0, %v23_v2  ;;  %564 = vmatprep.mubr.msk.f32.mxu1 %vm118_vm0, %v27_v7 }
  0x4c   :  { %557 = vmatmul.mubr.msk.f32.gmra.mrb[4].mxu0 %vm118_vm0, %v23_v2  ;;  %565 = vmatmul.mubr.msk.f32.gmra.mrb[4].mxu1 %vm118_vm0, %v27_v7 }
  0x4d   :  { %558 = vmatprep.mubr.msk.f32.mxu0 %vm118_vm0, %v24_v8  ;;  %566 = vmatprep.mubr.msk.f32.mxu1 %vm118_vm0, %v28_v9 }
  0x50   :  { %559 = vmatmul.mubr.msk.f32.gmra.mrb[6].mxu0 %vm118_vm0, %v24_v8  ;;  %567 = vmatmul.mubr.msk.f32.gmra.mrb[6].mxu1 %vm118_vm0, %v28_v9 }
  0x87   :  { %v81_v10 = vpop.permute.xlu0 %80  ;;  %v91_v11 = vpop.permute.xlu1 %90 }
  0x8b   :  { %v86_v12 = vpop.permute.xlu0 %85  ;;  %v96_v13 = vpop.permute.xlu1 %95 }
  0x8f   :  { %v371_v14 = vpop.permute.xlu0 %370  ;;  %v376_v15 = vpop.permute.xlu1 %375 }
  0x93   :  { %v101_v16 = vpop.permute.xlu0 %100  ;;  %v381_v17 = vpop.permute.xlu1 %380 }
  0x97   :  { %v106_v24 = vpop.permute.xlu0 %105  ;;  %v386_v25 = vpop.permute.xlu1 %385 }
  0x9b   :  { %v111_v43 = vpop.permute.xlu0 %110  ;;  %v391_v47 = vpop.permute.xlu1 %390 }
  0x9f   :  { %v116_v5 = vpop.permute.xlu0 %115 }
 0x117   :  { %v305_v18 = vpop.f32.mrb[0].mxu0  ;;  %v329_v19 = vpop.f32.mrb[0].mxu1 }
 0x118   :  { %v306_v20 = vadd.f32 %v305_v18, %v81_v10  ;;  %v307_v21 = vpop.f32.mrb[1].mxu0  ;;  %v331_v22 = vpop.f32.mrb[1].mxu1  ;;  %v330_v48 = vadd.f32 %v329_v19, %v101_v16 }
 0x119   :  { %v308_v23 = vadd.f32 %v307_v21, %v81_v10  ;;  %v332_v51 = vadd.f32 %v331_v22, %v101_v16 }
 0x11a   :  { %v352_v28 = vmax.f32 %v306_v20, 0.0  ;;  %v360_v0 = vmax.f32 %v330_v48, 0.0  ;;  %v459_v48 = vlaneseq }
 0x11b   :  { %v311_v26 = vpop.f32.mrb[2].mxu0  ;;  %v335_v27 = vpop.f32.mrb[2].mxu1  ;;  %v353_v32 = vmax.f32 %v308_v23, 0.0  ;;  %v361_v6 = vmax.f32 %v332_v51, 0.0 }
 0x11c   :  { %v312_v29 = vadd.f32 %v311_v26, %v86_v12  ;;  %v313_v30 = vpop.f32.mrb[3].mxu0  ;;  %v337_v31 = vpop.f32.mrb[3].mxu1  ;;  %v408_v38 = vmul.f32 %v371_v14, %v352_v28  ;;  %v336_v56 = vadd.f32 %v335_v27, %v106_v24  ;;  %v416_v18 = vmul.f32 %v391_v47, %v360_v0 }
 0x11d   :  { %v314_v33 = vadd.f32 %v313_v30, %v86_v12  ;;  %v409_v44 = vmul.f32 %v371_v14, %v353_v32  ;;  %v338_v61 = vadd.f32 %v337_v31, %v106_v24  ;;  %v396_v12 = vpop.permute.xlu1 %395  ;;  %v401_v26 = vpop.permute.xlu0 %400  ;;  %vm473_vm2 = vcmp.lt.s32.totalorder %v459_v48, 256 }
 0x11e   :  { %v354_v34 = vmax.f32 %v312_v29, 0.0  ;;  %v362_v9 = vmax.f32 %v336_v56, 0.0 }
 0x11f   :  { %v355_v35 = vmax.f32 %v314_v33, 0.0  ;;  %v317_v36 = vpop.f32.mrb[4].mxu0  ;;  %v341_v37 = vpop.f32.mrb[4].mxu1  ;;  %v363_v14 = vmax.f32 %v338_v61, 0.0 }
 0x120   :  { %v410_v39 = vmul.f32 %v376_v15, %v354_v34  ;;  %v318_v40 = vadd.f32 %v317_v36, %v91_v11  ;;  %v319_v41 = vpop.f32.mrb[5].mxu0  ;;  %v343_v42 = vpop.f32.mrb[5].mxu1  ;;  %v342_v3 = vadd.f32 %v341_v37, %v111_v43  ;;  %v418_v22 = vmul.f32 %v396_v12, %v362_v9 }
 0x121   :  { %v411_v45 = vmul.f32 %v376_v15, %v355_v35  ;;  %v320_v46 = vadd.f32 %v319_v41, %v91_v11  ;;  %v344_v7 = vadd.f32 %v343_v42, %v111_v43  ;;  %v419_v27 = vmul.f32 %v396_v12, %v363_v14  ;;  %v406_v32 = vpop.permute.xlu1 %405 }
 0x122   :  { %v424_v49 = vadd.f32 %v410_v39, %v408_v38  ;;  %v356_v50 = vmax.f32 %v318_v40, 0.0  ;;  %v364_v19 = vmax.f32 %v342_v3, 0.0 }
 0x123   :  { %v437_v52 = vadd.f32 %v411_v45, %v409_v44  ;;  %v357_v53 = vmax.f32 %v320_v46, 0.0  ;;  %v323_v54 = vpop.f32.mrb[6].mxu0  ;;  %v347_v55 = vpop.f32.mrb[6].mxu1  ;;  %v365_v20 = vmax.f32 %v344_v7, 0.0  ;;  %v637_v46 = vmov 1966171168  }
 0x124   :  { %v412_v57 = vmul.f32 %v381_v17, %v356_v50  ;;  %v324_v58 = vadd.f32 %v323_v54, %v96_v13  ;;  %v325_v59 = vpop.f32.mrb[7].mxu0  ;;  %v349_v60 = vpop.f32.mrb[7].mxu1  ;;  %v348_v11 = vadd.f32 %v347_v55, %v116_v5  ;;  %v420_v30 = vmul.f32 %v401_v26, %v364_v19 }
 0x125   :  { %v413_v62 = vmul.f32 %v381_v17, %v357_v53  ;;  %v326_v63 = vadd.f32 %v325_v59, %v96_v13  ;;  %v350_v16 = vadd.f32 %v349_v60, %v116_v5  ;;  %v417_v13 = vmul.f32 %v391_v47, %v361_v6 }
 0x126   :  { %v425_v1 = vadd.f32 %v424_v49, %v412_v57  ;;  %v358_v4 = vmax.f32 %v324_v58, 0.0  ;;  %v366_v24 = vmax.f32 %v348_v11, 0.0  ;;  %v421_v33 = vmul.f32 %v401_v26, %v365_v20 }
 0x127   :  { %v438_v2 = vadd.f32 %v437_v52, %v413_v62  ;;  %v359_v8 = vmax.f32 %v326_v63, 0.0  ;;  %v367_v29 = vmax.f32 %v350_v16, 0.0  ;;  %v457_v47 = vunpack.c.l.s4 %v637_v46 }
 0x128   :  { %v414_v10 = vmul.f32 %v386_v25, %v358_v4  ;;  %v450_v52 = vstv %s940_s4  ;;  %v460_v55 = vshrl.u32 %v459_v48, 7 }
 0x129   :  { %v415_v15 = vmul.f32 %v386_v25, %v359_v8  ;;  %v422_v25 = vmul.f32 %v406_v32, %v366_v24  ;;  %v423_v36 = vmul.f32 %v406_v32, %v367_v29  ;;  %v458_v54 = vunpack.c.0.s8 %v457_v47 }
 0x12a   :  { %v426_v17 = vadd.f32 %v425_v1, %v414_v10 }
 0x12b   :  { %v439_v21 = vadd.f32 %v438_v2, %v415_v15  ;;  %v461_v60 = vsub.s32 %v458_v54, %v460_v55 }
 0x12c   :  { %v427_v23 = vadd.f32 %v426_v17, %v416_v18 }
 0x12d   :  { %v440_v28 = vadd.f32 %v439_v21, %v417_v13 }
 0x12e   :  { %v428_v31 = vadd.f32 %v427_v23, %v418_v22 }
 0x12f   :  { %v441_v34 = vadd.f32 %v440_v28, %v419_v27 }
 0x130   :  { %v429_v35 = vadd.f32 %v428_v31, %v420_v30 }
 0x131   :  { %v442_v37 = vadd.f32 %v441_v34, %v421_v33 }
 0x132   :  { %v430_v38 = vadd.f32 %v429_v35, %v422_v25 }
 0x133   :  { %v443_v39 = vadd.f32 %v442_v37, %v423_v36 }
 0x134   :  { %v431_v40 = vrot.slane %v430_v38, 4 }
 0x135   :  { %v444_v41 = vrot.slane %v443_v39, 4 }
 0x136   :  { %v432_v42 = vadd.f32 %v431_v40, %v430_v38 }
 0x137   :  { %v445_v43 = vadd.f32 %v444_v41, %v443_v39 }
 0x138   :  { %v433_v44 = vrot.slane %v432_v42, 2 }
 0x139   :  { %v446_v45 = vrot.slane %v445_v43, 2 }
 0x13a   :  { %v434_v49 = vadd.f32 %v433_v44, %v432_v42 }
 0x13b   :  { %v447_v50 = vadd.f32 %v446_v45, %v445_v43 }
 0x13c   :  { %v435_v51 = vrot.slane %v434_v49, 1 }
 0x13d   :  { %v448_v53 = vrot.slane %v447_v50, 1 }
 0x13e   :  { %v436_v56 = vadd.f32 %v435_v51, %v434_v49 }
 0x13f   :  { %v449_v57 = vadd.f32 %v448_v53, %v447_v50 }
 0x140   :  { %v451_v58 = vadd.f32 %v450_v52, %v436_v56 }
 0x141   :  { %v452_v59 = vadd.f32 %v450_v52, %v449_v57 }
 0x143   :  { %v455_v61 = vcombine.low %v451_v58, %v452_v59 }
 0x145   :  { %v462_v62 = vrot.slane %v455_v61, %v461_v60 }
 0x147   :  { %v469_v63 = vrot.slane %v462_v62, %v461_v60 }
 0x149   :  { %475 = vst.msk [vmem:[%s941_s5] sm:$0x3] %vm473_vm2, %v469_v63 }

</bundles_post_ra>
